<compile_context>
chip_gen: v6e
topology: v6e:2x2x1
jax: 0.10.0
libtpu: 0.0.40
codegen_flags: <defaults>
</compile_context>

<pallas_src>
import jax
import jax.numpy as jnp
from jax.experimental import pallas as pl
from jax.experimental.pallas import tpu as pltpu


def _pose_conv1x1_kernel(x_ref, w_ref, b_ref, o_ref):
    # x_ref: (C_in, t_hw)   channels in sublanes, spatial in lanes (lane-dense)
    # w_ref: (C_out, C_in)  tiny, VMEM-resident across the whole grid
    # b_ref: (C_out, 1)     f32 bias, broadcast over lanes
    # o_ref: (C_out, t_hw)  lane-dense output block
    acc = jnp.dot(w_ref[...], x_ref[...], preferred_element_type=jnp.float32)
    o_ref[...] = (acc + b_ref[...]).astype(o_ref.dtype)


def pose_head_forward(x_nchw, weight, bias, num_anchors=3, t_hw=2048):
    """PoseHead forward.

    x_nchw: (N, C_in, H, W)
    weight: (C_out, C_in)  -- from PyTorch conv weight (C_out, C_in, 1, 1)
    bias:   (C_out,)
    Returns (N, H*W*num_anchors, 2), matching
    conv1x1(x).permute(0, 2, 3, 1).view(N, -1, 2).
    """
    N, C_in, H, W = x_nchw.shape
    C_out = weight.shape[0]
    assert C_out == num_anchors * 2

    HW = H * W
    # Pure view: NCHW is contiguous, so merging H,W costs no data movement.
    x3 = x_nchw.reshape(N, C_in, HW)

    # Spatial (lane) tile: multiple of 128, or the full extent if HW isn't.
    if HW % 128 == 0:
        t = min(t_hw, HW)
        t = max(t - (t % 128), 128)
    else:
        t = HW  # full-extent last dim is always a legal block
    grid = (N, pl.cdiv(HW, t))

    w_mat = weight.astype(x3.dtype)                       # (C_out, C_in)
    b_mat = bias.astype(jnp.float32).reshape(C_out, 1)    # f32 bias add

    out_cf = pl.pallas_call(
        _pose_conv1x1_kernel,
        out_shape=jax.ShapeDtypeStruct((N, C_out, HW), x3.dtype),
        grid_spec=pltpu.PrefetchScalarGridSpec(
            num_scalar_prefetch=0,
            grid=grid,
            in_specs=[
                # batch dim squeezed (None); channels full-extent; spatial tiled.
                pl.BlockSpec((None, C_in, t), lambda n, j: (n, 0, j)),
                pl.BlockSpec((C_out, C_in), lambda n, j: (0, 0)),
                pl.BlockSpec((C_out, 1), lambda n, j: (0, 0)),
            ],
            out_specs=pl.BlockSpec((None, C_out, t), lambda n, j: (n, 0, j)),
        ),
        compiler_params=pltpu.CompilerParams(
            dimension_semantics=("parallel", "parallel")),
    )(x3, w_mat, b_mat)

    # Channels-first (N, C_out, HW) -> (N, HW, C_out) -> (N, HW*anchors, 2).
    # This transposes only the small C_out-wide output, not the input.
    out_nhwc = jnp.transpose(out_cf, (0, 2, 1))
    return out_nhwc.reshape(N, HW * num_anchors, 2)


def _reference(x_nchw, weight, bias, num_anchors=3):
    # Pure-JAX reference of the PyTorch forward.
    N, C_in, H, W = x_nchw.shape
    out = jnp.einsum("nchw,oc->nohw", x_nchw, weight) + bias[None, :, None, None]
    out = jnp.transpose(out, (0, 2, 3, 1))
    return out.reshape(N, -1, 2)


if __name__ == "__main__":
    key = jax.random.PRNGKey(0)
    k_x, k_w, k_b = jax.random.split(key, 3)

    # Small shapes consistent with the module (inchannels is a free parameter;
    # num_anchors=3 -> C_out=6, final reshape to (..., 2)).
    N, C_in, H, W = 2, 16, 16, 16
    num_anchors = 3
    C_out = num_anchors * 2

    x = jax.random.normal(k_x, (N, C_in, H, W), dtype=jnp.float32)
    # PyTorch conv weight is (C_out, C_in, 1, 1); we use the squeezed matrix.
    weight = jax.random.normal(k_w, (C_out, C_in), dtype=jnp.float32) * 0.1
    bias = jax.random.normal(k_b, (C_out,), dtype=jnp.float32) * 0.1

    out = pose_head_forward(x, weight, bias, num_anchors=num_anchors)
    out = jax.block_until_ready(out)

    ref = _reference(x, weight, bias, num_anchors=num_anchors)
    assert out.shape == (N, H * W * num_anchors, 2), out.shape
    assert jnp.allclose(out, ref, atol=1e-5, rtol=1e-5)

    print("KERNEL_OK")
</pallas_src>

<mosaic_0001>
module attributes {stable_mosaic.version = 11 : i64} {
  func.func @_pose_conv1x1_kernel(%arg0: i32, %arg1: i32, %arg2: memref<1x16x256xf32, #tpu.memory_space<vmem>>, %arg3: memref<6x16xf32, #tpu.memory_space<vmem>>, %arg4: memref<6x1xf32, #tpu.memory_space<vmem>>, %arg5: memref<1x6x256xf32, #tpu.memory_space<vmem>>) attributes {dimension_semantics = [#tpu.dimension_semantics<parallel>, #tpu.dimension_semantics<parallel>], iteration_bounds = array<i64: 2, 1>, scalar_prefetch = 0 : i64, scratch_operands = 0 : i64, tpu.core_type = #tpu.core_type<tc>, window_params = [{transform_indices = @transform_0, window_bounds = array<i64: 1, 16, 256>}, {pipeline_mode = #tpu.pipeline_mode<synchronous>, transform_indices = @transform_1, window_bounds = array<i64: 6, 16>}, {pipeline_mode = #tpu.pipeline_mode<synchronous>, transform_indices = @transform_2, window_bounds = array<i64: 6, 1>}, {transform_indices = @transform_3, window_bounds = array<i64: 1, 6, 256>}]} {
    %c0 = arith.constant 0 : index
    %c0_0 = arith.constant 0 : index
    %0 = vector.load %arg3[%c0, %c0_0] : memref<6x16xf32, #tpu.memory_space<vmem>>, vector<6x16xf32>
    %c0_1 = arith.constant 0 : index
    %c0_2 = arith.constant 0 : index
    %c0_3 = arith.constant 0 : index
    %1 = vector.load %arg2[%c0_1, %c0_2, %c0_3] : memref<1x16x256xf32, #tpu.memory_space<vmem>>, vector<1x16x256xf32>
    %2 = vector.shape_cast %1 : vector<1x16x256xf32> to vector<16x256xf32>
    %cst = arith.constant dense<0.000000e+00> : vector<6x256xf32>
    %3 = tpu.matmul %0, %2, %cst {dimension_numbers = #tpu.dot_dimension_numbers<[1], [0], [0], [1], [0, 0, 1, 1], [], []>} : vector<6x16xf32>, vector<16x256xf32>, vector<6x256xf32> -> vector<6x256xf32>
    %c0_4 = arith.constant 0 : index
    %c0_5 = arith.constant 0 : index
    %4 = vector.load %arg4[%c0_4, %c0_5] : memref<6x1xf32, #tpu.memory_space<vmem>>, vector<6x1xf32>
    %5 = vector.broadcast %4 : vector<6x1xf32> to vector<6x256xf32>
    %6 = arith.addf %3, %5 : vector<6x256xf32>
    %c0_6 = arith.constant 0 : index
    %c0_7 = arith.constant 0 : index
    %c0_8 = arith.constant 0 : index
    %7 = vector.load %arg5[%c0_6, %c0_7, %c0_8] : memref<1x6x256xf32, #tpu.memory_space<vmem>>, vector<1x6x256xf32>
    %8 = vector.shape_cast %7 : vector<1x6x256xf32> to vector<6x256xf32>
    %9 = vector.shape_cast %6 : vector<6x256xf32> to vector<1x6x256xf32>
    tpu.vector_store %arg5[%c0_6, %c0_7, %c0_8], %9 {strides = array<i32>} : memref<1x6x256xf32, #tpu.memory_space<vmem>>, vector<1x6x256xf32>,
    return
  }
  func.func @transform_0(%arg0: i32, %arg1: i32) -> (i32, i32, i32) {
    %c0_i32 = arith.constant 0 : i32
    %c0_i32_0 = arith.constant 0 : i32
    return %arg0, %c0_i32, %arg1 : i32, i32, i32
  }
  func.func @transform_1(%arg0: i32, %arg1: i32) -> (i32, i32) {
    %c0_i32 = arith.constant 0 : i32
    %c0_i32_0 = arith.constant 0 : i32
    %c0_i32_1 = arith.constant 0 : i32
    return %c0_i32, %c0_i32_0 : i32, i32
  }
  func.func @transform_2(%arg0: i32, %arg1: i32) -> (i32, i32) {
    %c0_i32 = arith.constant 0 : i32
    %c0_i32_0 = arith.constant 0 : i32
    %c0_i32_1 = arith.constant 0 : i32
    return %c0_i32, %c0_i32_0 : i32, i32
  }
  func.func @transform_3(%arg0: i32, %arg1: i32) -> (i32, i32, i32) {
    %c0_i32 = arith.constant 0 : i32
    %c0_i32_0 = arith.constant 0 : i32
    return %arg0, %c0_i32, %arg1 : i32, i32, i32
  }
}

</mosaic_0001>

<bundles_post_ra>
// kernel: tpu_custom_call.1
= control target key start
LH: loop header
LB: loop body
LE: loop exit
PB: predicated region body
PF: predicated region fallthrough
CT: control target
= control target key end

     0   :  { %8 = vsyncpa [#allocation3], 0  ;;  %s685_s0 = inlined_call_operand.hbm [shape: f32[2,16,256], index: 0, kind: input, shape index: {}]   ;;  %s686_s1 = inlined_call_operand.vmem [shape: f32[6,16], index: 1, kind: input, shape index: {}]   ;;  %s687_s2 = inlined_call_operand.vmem [shape: f32[6,1], index: 2, kind: input, shape index: {}]   ;;  %s688_s3 = inlined_call_operand.vmem [shape: f32[2,6,256], index: 3, kind: output, shape index: {}]  }
   0x1   :  { %10 = vsyncpa [#allocation3 + $0x1], 0  ;;  %s583_s12 = smov 0   ;;  %s585_s13 = smov 0  }
   0x2   :  { %s587_s14 = smov 0   ;;  %s589_s15 = smov 0  }
   0x3   :  { %s591_s16 = smov 0   ;;  %s593_s17 = smov 0  }
   0x4 LB: > { %s402_s18 = sadd.s32 4294967295, %s556_s17   ;;  %s28_s19 = sadd.s32 1, %s552_s16  ;;  %s556_s17 = sphi %s593_s17, %s16_s17   ;;  %s552_s16 = sphi %s591_s16, %s696_s16   ;;  %s548_s15 = sphi %s589_s15, %s695_s15   ;;  %s544_s14 = sphi %s587_s14, %s694_s14   ;;  %s540_s13 = sphi %s585_s13, %s693_s13   ;;  %s536_s12 = sphi %s583_s12, %s692_s12  }
   0x5   : > { %p30_p0 = scmp.ge.s32.totalorder %s28_s19, 2  ;;  %s37_s20 = sadd.s32 1, %s544_s14 }
   0x6   : > { %p44_p1 = scmp.ne.s32.totalorder %s544_s14, %s540_s13  ;;  %p45_p2 = scmp.eq.s32.totalorder %s556_s17, 0 }
   0x7   : > { %s698_s19 = smov (%p30_p0, %s28_s19), 0  ;;  %p50_p4 = scmp.ne.s32.totalorder %s540_s13, %s536_s12 }
   0x8   : > { %p619_p3 = por %p45_p2, %p44_p1  ;;  %s32_s22 = ssub.s32 %s552_s16, %s698_s19 }
   0x9   : > { %p51_p5 = scmp.eq.s32.totalorder %s402_s18, 0  ;;  %p35_p6 = scmp.eq.s32.totalorder %s32_s22, 0 }
   0xa   : > { %p424_p8 = scmp.lt.s32.totalorder %s556_s17, 2  ;;  %s150_s25 = sand.u32 1, %s544_s14  }
   0xb   : > { %p626_p7 = por %p51_p5, %p50_p4  ;;  %s416_s26 = sshll.u32 %s552_s16, 9 }
   0xc   : > { %s632_s24 = scalar_select %p35_p6, %s544_s14, %s37_s20  }
   0xd   : > { %s406_s27 = sshll.u32 %s150_s25, 5  ;;  %s162_s30 = scalar_lea.hbm %s685_s0, %s416_s26 }
   0xe   : > { %s154_s4 = scalar_lea.vmem [#allocation2], %s406_s27  ;;  %p641_p9 = pnand %p424_p8, %p619_p3 }
   0xf   : > { %s163_s5 = sshll.u32 %s154_s4, 4  ;;  %s151_s7 = scalar_lea.sflag [#allocation3], %s150_s25  ;;  %s164_s5 = int_to_ptr.vmem [resolvable:$true] %s163_s5 }
  0x10   : > { %p480_p10 = pneg %p641_p9  ;;  %s491_s8 = scalar_lea.vmem %s164_s5, 512 }
  0x11   : > { %p492_p11 = scmp.ne.s32.totalorder %s164_s5, %s491_s8  ;;  %s558_s9 = smov [#allocation2]  }
  0x12   : > { %s496_s10 = sshll.u32 %s558_s9, 4  ;;  %s497_s10 = int_to_ptr.vmem [resolvable:$false] %s496_s10 }
  0x13   : > { %p494_p12 = pnand %p492_p11, %p480_p10  ;;  %s498_s11 = scalar_lea.vmem %s497_s10, 1024 }
  0x14   : > { %p499_p0 = scmp.lt.s32.totalorder %s164_s5, %s497_s10  ;;  %p500_p1 = scmp.lt.s32.totalorder %s498_s11, %s491_s8 }
  0x15   : > { %p495_p13 = pneg %p494_p12 }
  0x16   : > { %p501_p2 = por %p500_p1, %p499_p0 }
  0x18   : > { %p502_p3 = pnand %p501_p2, %p495_p13 }
  0x1a   : > { %505 = shalt.err (!%p502_p3)
}
  0x1b   : > { %s559_s12 = smov 256   ;;  %s560_s18 = smov 16  }
  0x1c   : > { %423 = dma.hbm_to_vmem [thread:$0]  (!%p641_p9), %s162_s30, 512, %s164_s5, %s151_s7, %s559_s12, %s559_s12, %s560_s18  }
  0x1d   : > { %p409_p4 = scmp.ge.s32.totalorder %s556_s17, 1  ;;  %p171_p5 = scmp.lt.s32.totalorder %s556_s17, 3 }
  0x1f   : > { %p172_p6 = pnand %p409_p4, %p171_p5 }
  0x20   : > { %s177_s20 = sand.u32 (!%p172_p6), 1, %s540_s13  }
  0x21   : > { %175 = sbr.rel (%p172_p6) target bundleno = 243 (0xf3), region = 32  ;;  %s410_s21 = sshll.u32 (!%p172_p6), %s177_s20, 5 }
  0x22   : > { %s178_s22 = scalar_lea.sflag (!%p172_p6), [#allocation3], %s177_s20  ;;  %s181_s25 = scalar_lea.vmem (!%p172_p6), [#allocation2], %s410_s21 }
  0x26   : > { %531 = dma.done.wait (%p626_p7), %s178_s22, 512  }
  0x27   : > { %533 = vsyncadd (%p626_p7), %s178_s22, 4294966784  ;;  %v561_v0 = vmov 0.0   ;;  %v562_v1 = vmov 0   ;;  %v223_v2 = vld [vmem:[%s181_s25 + $0x18] sm:$0xff]  ;;  %v222_v3 = vld [vmem:[%s181_s25 + $0x10] sm:$0xff]  ;;  %vm230_vm0 = vcmask 130048  }
  0x28   : > { %298 = vmatprep.mubr.f32.mxu0 %v561_v0  ;;  %477 = vset.pattern.permute.xlu0 %v562_v1  ;;  %v221_v4 = vld [vmem:[%s181_s25 + $0x8] sm:$0xff]  ;;  %v220_v5 = vld [vmem:[%s181_s25] sm:$0xff]  ;;  %p210_p7 = scmp.lt.s32.totalorder %s548_s15, 1 }
  0x29   : > { %262 = vmatprep.subr.mxu0 %v223_v2  ;;  %v224_v6 = vld [vmem:[%s687_s2] sm:$0x3f] }
  0x2a   : > { %263 = vmatpush1.msra.mxu0 %v222_v3  ;;  %v219_v7 = vld [vmem:[%s686_s1] sm:$0x3f]  ;;  %227 = vperm.xlu0 %477, %v224_v6   ;;  %s700_s15 = smov (!%p210_p7, %s548_s15), 1 }
  0x2b   : > { %264 = vmatprep.subr.mxu0 %v221_v4  ;;  %s417_s23 = sshll.u32 %s700_s15, 4 }
  0x2c   : > { %265 = vmatpush1.msra.mxu0 %v220_v5  ;;  %s217_s5 = scalar_lea.vmem %s688_s3, %s417_s23 }
  0x2d   : > { %413 = vmatmul.mubr.msk.f32.vlgmr.msra.gmra.mxu0 %vm230_vm0, %v219_v7 }
  0xa5   : > { %v228_v8 = vpop.permute.xlu0 %227 }
  0xed   : > { %v300_v9 = vpop.f32.mrf.mxu0 }
  0xee   : > { %v301_v10 = vadd.f32 %v300_v9, %v228_v8 }
  0xef   : > { %v302_v11 = vpop.f32.mrf.mxu0 }
  0xf0   : > { %305 = vst [vmem:[%s217_s5] sm:$0x3f] %v301_v10  ;;  %v303_v12 = vadd.f32 %v302_v11, %v228_v8 }
  0xf2   : > { %306 = vst [vmem:[%s217_s5 + $0x8] sm:$0x3f] %v303_v12 }
  0xf3 PF: > { %s16_s17 = sadd.s32 1, %s556_s17   ;;  %s692_s12 = smov %s540_s13 }
  0xf4   : > { %p13_p8 = scmp.ge.s32.totalorder %s16_s17, 4   ;;  %s693_s13 = smov %s544_s14 }
  0xf5   : > { %s694_s14 = smov %s632_s24  ;;  %s695_s15 = smov %s552_s16 }
  0xf6   : > { %s696_s16 = smov %s698_s19  ;;  %15 = sbr.rel (!%p13_p8) target bundleno = 4 (0x4), region = 72 }
  0xfb   :  { %337 = vsyncpa [#allocation3], 1 }
  0xfc   :  { %339 = vsyncpa [#allocation3 + $0x1], 1 }

</bundles_post_ra>
